<compile_context>
chip_gen: v5e
topology: v5e:2x2
jax: 0.10.0
libtpu: 0.0.40
codegen_flags: <defaults>
</compile_context>

<pallas_src>
import functools
import math

import jax
import jax.numpy as jnp
from jax.experimental import pallas as pl
from jax.experimental.pallas import tpu as pltpu


def _embed_kernel(ids_ref, emb_hbm, o_ref, sem, *, tile, scale):
    """Gather `tile` embedding rows via parallel DMAs, then scale in place.

    ids_ref : SMEM  (n_tokens_padded,) int32   -- scalar-prefetched token ids
    emb_hbm : HBM   (vocab, d_model)           -- raw ref, manual DMA only
    o_ref   : VMEM  (tile, d_model)            -- output block for this step
    sem     : DMA semaphores, shape (tile,)
    """
    base = pl.program_id(0) * tile

    # Kick off all row gathers (HBM -> output VMEM block) so they overlap.
    for r in range(tile):
        idx = ids_ref[base + r]
        pltpu.make_async_copy(
            emb_hbm.at[pl.ds(idx, 1), :],
            o_ref.at[pl.ds(r, 1), :],
            sem.at[r],
        ).start()

    # Wait for every row, then scale the whole lane-dense block at once.
    for r in range(tile):
        pltpu.make_async_copy(
            emb_hbm.at[pl.ds(0, 1), :],
            o_ref.at[pl.ds(r, 1), :],
            sem.at[r],
        ).wait()

    o_ref[...] = o_ref[...] * scale  # scale = sqrt(d_model), weakly typed


def input_embeddings(token_ids, emb_table, *, tile=8):
    """Pallas equivalent of nn.Embedding(vocab, d_model)(x) * sqrt(d_model)."""
    vocab, d_model = emb_table.shape
    scale = math.sqrt(d_model)

    orig_shape = token_ids.shape
    flat = token_ids.reshape(-1).astype(jnp.int32)
    n = flat.shape[0]
    n_pad = pl.cdiv(n, tile) * tile
    if n_pad != n:
        flat = jnp.concatenate(
            [flat, jnp.zeros((n_pad - n,), jnp.int32)], axis=0)

    out = pl.pallas_call(
        functools.partial(_embed_kernel, tile=tile, scale=scale),
        out_shape=jax.ShapeDtypeStruct((n_pad, d_model), emb_table.dtype),
        grid_spec=pltpu.PrefetchScalarGridSpec(
            num_scalar_prefetch=1,                      # token ids -> SMEM
            grid=(n_pad // tile,),
            in_specs=[pl.BlockSpec(memory_space=pl.ANY)],   # table stays in HBM
            out_specs=pl.BlockSpec((tile, d_model), lambda t, ids: (t, 0)),
            scratch_shapes=[pltpu.SemaphoreType.DMA((tile,))],
        ),
        compiler_params=pltpu.CompilerParams(
            dimension_semantics=("parallel",),          # tiles are independent
        ),
    )(flat, emb_table)

    return out[:n].reshape(*orig_shape, d_model)


# ------------------------------- demo / test --------------------------------

if __name__ == "__main__":
    VOCAB, D_MODEL = 512, 128
    B, S = 2, 8

    key = jax.random.PRNGKey(0)
    k_emb, k_ids = jax.random.split(key)

    # nn.Embedding default init is N(0, 1)
    emb_table = jax.random.normal(k_emb, (VOCAB, D_MODEL), jnp.float32)
    token_ids = jax.random.randint(k_ids, (B, S), 0, VOCAB, dtype=jnp.int32)

    out = input_embeddings(token_ids, emb_table, tile=8)
    out = jax.block_until_ready(out)

    ref = emb_table[token_ids] * math.sqrt(D_MODEL)

    assert out.shape == (B, S, D_MODEL), out.shape
    assert jnp.allclose(out, ref, atol=1e-6, rtol=1e-6), "mismatch vs reference"

    print("KERNEL_OK")
</pallas_src>

<mosaic_0001>
module attributes {stable_mosaic.version = 11 : i64} {
  func.func @_embed_kernel(%arg0: i32, %arg1: memref<16xi32, #tpu.memory_space<smem>>, %arg2: memref<512x128xf32, #tpu.memory_space<any>>, %arg3: memref<8x128xf32, #tpu.memory_space<vmem>>, %arg4: memref<8x!tpu.dma_semaphore, #tpu.memory_space<semaphore_mem>>) attributes {dimension_semantics = [#tpu.dimension_semantics<parallel>], iteration_bounds = array<i64: 2>, scalar_prefetch = 1 : i64, scratch_operands = 1 : i64, tpu.core_type = #tpu.core_type<tc>, window_params = [{}, {transform_indices = @transform_1, window_bounds = array<i64: 8, 128>}]} {
    %c8_i32 = arith.constant 8 : i32
    %0 = arith.muli %arg0, %c8_i32 : i32
    %c0_i32 = arith.constant 0 : i32
    %1 = arith.addi %0, %c0_i32 : i32
    %2 = arith.index_cast %1 : i32 to index
    %3 = memref.load %arg1[%2] : memref<16xi32, #tpu.memory_space<smem>>
    %c0_i32_0 = arith.constant 0 : i32
    %c0_i32_1 = arith.constant 0 : i32
    %4 = tpu.memref_slice %arg2[%3, %c0_i32_1] : memref<512x128xf32, #tpu.memory_space<any>> -> memref<1x128xf32, #tpu.memory_space<any>>
    %c0_i32_2 = arith.constant 0 : i32
    %c0_i32_3 = arith.constant 0 : i32
    %5 = tpu.memref_slice %arg3[%c0_i32_2, %c0_i32_3] : memref<8x128xf32, #tpu.memory_space<vmem>> -> memref<1x128xf32, #tpu.memory_space<vmem>>
    %6 = tpu.memref_slice %arg4[%c0_i32_0] : memref<8x!tpu.dma_semaphore, #tpu.memory_space<semaphore_mem>> -> memref<1x!tpu.dma_semaphore, #tpu.memory_space<semaphore_mem>>
    %7 = tpu.memref_squeeze %6 : memref<1x!tpu.dma_semaphore, #tpu.memory_space<semaphore_mem>> -> memref<!tpu.dma_semaphore, #tpu.memory_space<semaphore_mem>>
    tpu.enqueue_dma source(%4 : memref<1x128xf32, #tpu.memory_space<any>>) target(%5 : memref<1x128xf32, #tpu.memory_space<vmem>>) target_semaphore(%7 : memref<!tpu.dma_semaphore, #tpu.memory_space<semaphore_mem>>)
    %c1_i32 = arith.constant 1 : i32
    %8 = arith.addi %0, %c1_i32 : i32
    %9 = arith.index_cast %8 : i32 to index
    %10 = memref.load %arg1[%9] : memref<16xi32, #tpu.memory_space<smem>>
    %c1_i32_4 = arith.constant 1 : i32
    %c0_i32_5 = arith.constant 0 : i32
    %11 = tpu.memref_slice %arg2[%10, %c0_i32_5] : memref<512x128xf32, #tpu.memory_space<any>> -> memref<1x128xf32, #tpu.memory_space<any>>
    %c1_i32_6 = arith.constant 1 : i32
    %c0_i32_7 = arith.constant 0 : i32
    %12 = tpu.memref_slice %arg3[%c1_i32_6, %c0_i32_7] : memref<8x128xf32, #tpu.memory_space<vmem>> -> memref<1x128xf32, #tpu.memory_space<vmem>>
    %13 = tpu.memref_slice %arg4[%c1_i32_4] : memref<8x!tpu.dma_semaphore, #tpu.memory_space<semaphore_mem>> -> memref<1x!tpu.dma_semaphore, #tpu.memory_space<semaphore_mem>>
    %14 = tpu.memref_squeeze %13 : memref<1x!tpu.dma_semaphore, #tpu.memory_space<semaphore_mem>> -> memref<!tpu.dma_semaphore, #tpu.memory_space<semaphore_mem>>
    tpu.enqueue_dma source(%11 : memref<1x128xf32, #tpu.memory_space<any>>) target(%12 : memref<1x128xf32, #tpu.memory_space<vmem>>) target_semaphore(%14 : memref<!tpu.dma_semaphore, #tpu.memory_space<semaphore_mem>>)
    %c2_i32 = arith.constant 2 : i32
    %15 = arith.addi %0, %c2_i32 : i32
    %16 = arith.index_cast %15 : i32 to index
    %17 = memref.load %arg1[%16] : memref<16xi32, #tpu.memory_space<smem>>
    %c2_i32_8 = arith.constant 2 : i32
    %c0_i32_9 = arith.constant 0 : i32
    %18 = tpu.memref_slice %arg2[%17, %c0_i32_9] : memref<512x128xf32, #tpu.memory_space<any>> -> memref<1x128xf32, #tpu.memory_space<any>>
    %c2_i32_10 = arith.constant 2 : i32
    %c0_i32_11 = arith.constant 0 : i32
    %19 = tpu.memref_slice %arg3[%c2_i32_10, %c0_i32_11] : memref<8x128xf32, #tpu.memory_space<vmem>> -> memref<1x128xf32, #tpu.memory_space<vmem>>
    %20 = tpu.memref_slice %arg4[%c2_i32_8] : memref<8x!tpu.dma_semaphore, #tpu.memory_space<semaphore_mem>> -> memref<1x!tpu.dma_semaphore, #tpu.memory_space<semaphore_mem>>
    %21 = tpu.memref_squeeze %20 : memref<1x!tpu.dma_semaphore, #tpu.memory_space<semaphore_mem>> -> memref<!tpu.dma_semaphore, #tpu.memory_space<semaphore_mem>>
    tpu.enqueue_dma source(%18 : memref<1x128xf32, #tpu.memory_space<any>>) target(%19 : memref<1x128xf32, #tpu.memory_space<vmem>>) target_semaphore(%21 : memref<!tpu.dma_semaphore, #tpu.memory_space<semaphore_mem>>)
    %c3_i32 = arith.constant 3 : i32
    %22 = arith.addi %0, %c3_i32 : i32
    %23 = arith.index_cast %22 : i32 to index
    %24 = memref.load %arg1[%23] : memref<16xi32, #tpu.memory_space<smem>>
    %c3_i32_12 = arith.constant 3 : i32
    %c0_i32_13 = arith.constant 0 : i32
    %25 = tpu.memref_slice %arg2[%24, %c0_i32_13] : memref<512x128xf32, #tpu.memory_space<any>> -> memref<1x128xf32, #tpu.memory_space<any>>
    %c3_i32_14 = arith.constant 3 : i32
    %c0_i32_15 = arith.constant 0 : i32
    %26 = tpu.memref_slice %arg3[%c3_i32_14, %c0_i32_15] : memref<8x128xf32, #tpu.memory_space<vmem>> -> memref<1x128xf32, #tpu.memory_space<vmem>>
    %27 = tpu.memref_slice %arg4[%c3_i32_12] : memref<8x!tpu.dma_semaphore, #tpu.memory_space<semaphore_mem>> -> memref<1x!tpu.dma_semaphore, #tpu.memory_space<semaphore_mem>>
    %28 = tpu.memref_squeeze %27 : memref<1x!tpu.dma_semaphore, #tpu.memory_space<semaphore_mem>> -> memref<!tpu.dma_semaphore, #tpu.memory_space<semaphore_mem>>
    tpu.enqueue_dma source(%25 : memref<1x128xf32, #tpu.memory_space<any>>) target(%26 : memref<1x128xf32, #tpu.memory_space<vmem>>) target_semaphore(%28 : memref<!tpu.dma_semaphore, #tpu.memory_space<semaphore_mem>>)
    %c4_i32 = arith.constant 4 : i32
    %29 = arith.addi %0, %c4_i32 : i32
    %30 = arith.index_cast %29 : i32 to index
    %31 = memref.load %arg1[%30] : memref<16xi32, #tpu.memory_space<smem>>
    %c4_i32_16 = arith.constant 4 : i32
    %c0_i32_17 = arith.constant 0 : i32
    %32 = tpu.memref_slice %arg2[%31, %c0_i32_17] : memref<512x128xf32, #tpu.memory_space<any>> -> memref<1x128xf32, #tpu.memory_space<any>>
    %c4_i32_18 = arith.constant 4 : i32
    %c0_i32_19 = arith.constant 0 : i32
    %33 = tpu.memref_slice %arg3[%c4_i32_18, %c0_i32_19] : memref<8x128xf32, #tpu.memory_space<vmem>> -> memref<1x128xf32, #tpu.memory_space<vmem>>
    %34 = tpu.memref_slice %arg4[%c4_i32_16] : memref<8x!tpu.dma_semaphore, #tpu.memory_space<semaphore_mem>> -> memref<1x!tpu.dma_semaphore, #tpu.memory_space<semaphore_mem>>
    %35 = tpu.memref_squeeze %34 : memref<1x!tpu.dma_semaphore, #tpu.memory_space<semaphore_mem>> -> memref<!tpu.dma_semaphore, #tpu.memory_space<semaphore_mem>>
    tpu.enqueue_dma source(%32 : memref<1x128xf32, #tpu.memory_space<any>>) target(%33 : memref<1x128xf32, #tpu.memory_space<vmem>>) target_semaphore(%35 : memref<!tpu.dma_semaphore, #tpu.memory_space<semaphore_mem>>)
    %c5_i32 = arith.constant 5 : i32
    %36 = arith.addi %0, %c5_i32 : i32
    %37 = arith.index_cast %36 : i32 to index
    %38 = memref.load %arg1[%37] : memref<16xi32, #tpu.memory_space<smem>>
    %c5_i32_20 = arith.constant 5 : i32
    %c0_i32_21 = arith.constant 0 : i32
    %39 = tpu.memref_slice %arg2[%38, %c0_i32_21] : memref<512x128xf32, #tpu.memory_space<any>> -> memref<1x128xf32, #tpu.memory_space<any>>
    %c5_i32_22 = arith.constant 5 : i32
    %c0_i32_23 = arith.constant 0 : i32
    %40 = tpu.memref_slice %arg3[%c5_i32_22, %c0_i32_23] : memref<8x128xf32, #tpu.memory_space<vmem>> -> memref<1x128xf32, #tpu.memory_space<vmem>>
    %41 = tpu.memref_slice %arg4[%c5_i32_20] : memref<8x!tpu.dma_semaphore, #tpu.memory_space<semaphore_mem>> -> memref<1x!tpu.dma_semaphore, #tpu.memory_space<semaphore_mem>>
    %42 = tpu.memref_squeeze %41 : memref<1x!tpu.dma_semaphore, #tpu.memory_space<semaphore_mem>> -> memref<!tpu.dma_semaphore, #tpu.memory_space<semaphore_mem>>
    tpu.enqueue_dma source(%39 : memref<1x128xf32, #tpu.memory_space<any>>) target(%40 : memref<1x128xf32, #tpu.memory_space<vmem>>) target_semaphore(%42 : memref<!tpu.dma_semaphore, #tpu.memory_space<semaphore_mem>>)
    %c6_i32 = arith.constant 6 : i32
    %43 = arith.addi %0, %c6_i32 : i32
    %44 = arith.index_cast %43 : i32 to index
    %45 = memref.load %arg1[%44] : memref<16xi32, #tpu.memory_space<smem>>
    %c6_i32_24 = arith.constant 6 : i32
    %c0_i32_25 = arith.constant 0 : i32
    %46 = tpu.memref_slice %arg2[%45, %c0_i32_25] : memref<512x128xf32, #tpu.memory_space<any>> -> memref<1x128xf32, #tpu.memory_space<any>>
    %c6_i32_26 = arith.constant 6 : i32
    %c0_i32_27 = arith.constant 0 : i32
    %47 = tpu.memref_slice %arg3[%c6_i32_26, %c0_i32_27] : memref<8x128xf32, #tpu.memory_space<vmem>> -> memref<1x128xf32, #tpu.memory_space<vmem>>
    %48 = tpu.memref_slice %arg4[%c6_i32_24] : memref<8x!tpu.dma_semaphore, #tpu.memory_space<semaphore_mem>> -> memref<1x!tpu.dma_semaphore, #tpu.memory_space<semaphore_mem>>
    %49 = tpu.memref_squeeze %48 : memref<1x!tpu.dma_semaphore, #tpu.memory_space<semaphore_mem>> -> memref<!tpu.dma_semaphore, #tpu.memory_space<semaphore_mem>>
    tpu.enqueue_dma source(%46 : memref<1x128xf32, #tpu.memory_space<any>>) target(%47 : memref<1x128xf32, #tpu.memory_space<vmem>>) target_semaphore(%49 : memref<!tpu.dma_semaphore, #tpu.memory_space<semaphore_mem>>)
    %c7_i32 = arith.constant 7 : i32
    %50 = arith.addi %0, %c7_i32 : i32
    %51 = arith.index_cast %50 : i32 to index
    %52 = memref.load %arg1[%51] : memref<16xi32, #tpu.memory_space<smem>>
    %c7_i32_28 = arith.constant 7 : i32
    %c0_i32_29 = arith.constant 0 : i32
    %53 = tpu.memref_slice %arg2[%52, %c0_i32_29] : memref<512x128xf32, #tpu.memory_space<any>> -> memref<1x128xf32, #tpu.memory_space<any>>
    %c7_i32_30 = arith.constant 7 : i32
    %c0_i32_31 = arith.constant 0 : i32
    %54 = tpu.memref_slice %arg3[%c7_i32_30, %c0_i32_31] : memref<8x128xf32, #tpu.memory_space<vmem>> -> memref<1x128xf32, #tpu.memory_space<vmem>>
    %55 = tpu.memref_slice %arg4[%c7_i32_28] : memref<8x!tpu.dma_semaphore, #tpu.memory_space<semaphore_mem>> -> memref<1x!tpu.dma_semaphore, #tpu.memory_space<semaphore_mem>>
    %56 = tpu.memref_squeeze %55 : memref<1x!tpu.dma_semaphore, #tpu.memory_space<semaphore_mem>> -> memref<!tpu.dma_semaphore, #tpu.memory_space<semaphore_mem>>
    tpu.enqueue_dma source(%53 : memref<1x128xf32, #tpu.memory_space<any>>) target(%54 : memref<1x128xf32, #tpu.memory_space<vmem>>) target_semaphore(%56 : memref<!tpu.dma_semaphore, #tpu.memory_space<semaphore_mem>>)
    %c0_i32_32 = arith.constant 0 : i32
    %c0_i32_33 = arith.constant 0 : i32
    %c0_i32_34 = arith.constant 0 : i32
    %57 = tpu.memref_slice %arg2[%c0_i32_33, %c0_i32_34] : memref<512x128xf32, #tpu.memory_space<any>> -> memref<1x128xf32, #tpu.memory_space<any>>
    %c0_i32_35 = arith.constant 0 : i32
    %c0_i32_36 = arith.constant 0 : i32
    %58 = tpu.memref_slice %arg3[%c0_i32_35, %c0_i32_36] : memref<8x128xf32, #tpu.memory_space<vmem>> -> memref<1x128xf32, #tpu.memory_space<vmem>>
    %59 = tpu.memref_slice %arg4[%c0_i32_32] : memref<8x!tpu.dma_semaphore, #tpu.memory_space<semaphore_mem>> -> memref<1x!tpu.dma_semaphore, #tpu.memory_space<semaphore_mem>>
    %60 = tpu.memref_squeeze %59 : memref<1x!tpu.dma_semaphore, #tpu.memory_space<semaphore_mem>> -> memref<!tpu.dma_semaphore, #tpu.memory_space<semaphore_mem>>
    tpu.wait_dma2 semaphore(%60 : memref<!tpu.dma_semaphore, #tpu.memory_space<semaphore_mem>>) src(%57 : memref<1x128xf32, #tpu.memory_space<any>>) dst(%58 : memref<1x128xf32, #tpu.memory_space<vmem>>)
    %c1_i32_37 = arith.constant 1 : i32
    %c0_i32_38 = arith.constant 0 : i32
    %c0_i32_39 = arith.constant 0 : i32
    %61 = tpu.memref_slice %arg2[%c0_i32_38, %c0_i32_39] : memref<512x128xf32, #tpu.memory_space<any>> -> memref<1x128xf32, #tpu.memory_space<any>>
    %c1_i32_40 = arith.constant 1 : i32
    %c0_i32_41 = arith.constant 0 : i32
    %62 = tpu.memref_slice %arg3[%c1_i32_40, %c0_i32_41] : memref<8x128xf32, #tpu.memory_space<vmem>> -> memref<1x128xf32, #tpu.memory_space<vmem>>
    %63 = tpu.memref_slice %arg4[%c1_i32_37] : memref<8x!tpu.dma_semaphore, #tpu.memory_space<semaphore_mem>> -> memref<1x!tpu.dma_semaphore, #tpu.memory_space<semaphore_mem>>
    %64 = tpu.memref_squeeze %63 : memref<1x!tpu.dma_semaphore, #tpu.memory_space<semaphore_mem>> -> memref<!tpu.dma_semaphore, #tpu.memory_space<semaphore_mem>>
    tpu.wait_dma2 semaphore(%64 : memref<!tpu.dma_semaphore, #tpu.memory_space<semaphore_mem>>) src(%61 : memref<1x128xf32, #tpu.memory_space<any>>) dst(%62 : memref<1x128xf32, #tpu.memory_space<vmem>>)
    %c2_i32_42 = arith.constant 2 : i32
    %c0_i32_43 = arith.constant 0 : i32
    %c0_i32_44 = arith.constant 0 : i32
    %65 = tpu.memref_slice %arg2[%c0_i32_43, %c0_i32_44] : memref<512x128xf32, #tpu.memory_space<any>> -> memref<1x128xf32, #tpu.memory_space<any>>
    %c2_i32_45 = arith.constant 2 : i32
    %c0_i32_46 = arith.constant 0 : i32
    %66 = tpu.memref_slice %arg3[%c2_i32_45, %c0_i32_46] : memref<8x128xf32, #tpu.memory_space<vmem>> -> memref<1x128xf32, #tpu.memory_space<vmem>>
    %67 = tpu.memref_slice %arg4[%c2_i32_42] : memref<8x!tpu.dma_semaphore, #tpu.memory_space<semaphore_mem>> -> memref<1x!tpu.dma_semaphore, #tpu.memory_space<semaphore_mem>>
    %68 = tpu.memref_squeeze %67 : memref<1x!tpu.dma_semaphore, #tpu.memory_space<semaphore_mem>> -> memref<!tpu.dma_semaphore, #tpu.memory_space<semaphore_mem>>
    tpu.wait_dma2 semaphore(%68 : memref<!tpu.dma_semaphore, #tpu.memory_space<semaphore_mem>>) src(%65 : memref<1x128xf32, #tpu.memory_space<any>>) dst(%66 : memref<1x128xf32, #tpu.memory_space<vmem>>)
    %c3_i32_47 = arith.constant 3 : i32
    %c0_i32_48 = arith.constant 0 : i32
    %c0_i32_49 = arith.constant 0 : i32
    %69 = tpu.memref_slice %arg2[%c0_i32_48, %c0_i32_49] : memref<512x128xf32, #tpu.memory_space<any>> -> memref<1x128xf32, #tpu.memory_space<any>>
    %c3_i32_50 = arith.constant 3 : i32
    %c0_i32_51 = arith.constant 0 : i32
    %70 = tpu.memref_slice %arg3[%c3_i32_50, %c0_i32_51] : memref<8x128xf32, #tpu.memory_space<vmem>> -> memref<1x128xf32, #tpu.memory_space<vmem>>
    %71 = tpu.memref_slice %arg4[%c3_i32_47] : memref<8x!tpu.dma_semaphore, #tpu.memory_space<semaphore_mem>> -> memref<1x!tpu.dma_semaphore, #tpu.memory_space<semaphore_mem>>
    %72 = tpu.memref_squeeze %71 : memref<1x!tpu.dma_semaphore, #tpu.memory_space<semaphore_mem>> -> memref<!tpu.dma_semaphore, #tpu.memory_space<semaphore_mem>>
    tpu.wait_dma2 semaphore(%72 : memref<!tpu.dma_semaphore, #tpu.memory_space<semaphore_mem>>) src(%69 : memref<1x128xf32, #tpu.memory_space<any>>) dst(%70 : memref<1x128xf32, #tpu.memory_space<vmem>>)
    %c4_i32_52 = arith.constant 4 : i32
    %c0_i32_53 = arith.constant 0 : i32
    %c0_i32_54 = arith.constant 0 : i32
    %73 = tpu.memref_slice %arg2[%c0_i32_53, %c0_i32_54] : memref<512x128xf32, #tpu.memory_space<any>> -> memref<1x128xf32, #tpu.memory_space<any>>
    %c4_i32_55 = arith.constant 4 : i32
    %c0_i32_56 = arith.constant 0 : i32
    %74 = tpu.memref_slice %arg3[%c4_i32_55, %c0_i32_56] : memref<8x128xf32, #tpu.memory_space<vmem>> -> memref<1x128xf32, #tpu.memory_space<vmem>>
    %75 = tpu.memref_slice %arg4[%c4_i32_52] : memref<8x!tpu.dma_semaphore, #tpu.memory_space<semaphore_mem>> -> memref<1x!tpu.dma_semaphore, #tpu.memory_space<semaphore_mem>>
    %76 = tpu.memref_squeeze %75 : memref<1x!tpu.dma_semaphore, #tpu.memory_space<semaphore_mem>> -> memref<!tpu.dma_semaphore, #tpu.memory_space<semaphore_mem>>
    tpu.wait_dma2 semaphore(%76 : memref<!tpu.dma_semaphore, #tpu.memory_space<semaphore_mem>>) src(%73 : memref<1x128xf32, #tpu.memory_space<any>>) dst(%74 : memref<1x128xf32, #tpu.memory_space<vmem>>)
    %c5_i32_57 = arith.constant 5 : i32
    %c0_i32_58 = arith.constant 0 : i32
    %c0_i32_59 = arith.constant 0 : i32
    %77 = tpu.memref_slice %arg2[%c0_i32_58, %c0_i32_59] : memref<512x128xf32, #tpu.memory_space<any>> -> memref<1x128xf32, #tpu.memory_space<any>>
    %c5_i32_60 = arith.constant 5 : i32
    %c0_i32_61 = arith.constant 0 : i32
    %78 = tpu.memref_slice %arg3[%c5_i32_60, %c0_i32_61] : memref<8x128xf32, #tpu.memory_space<vmem>> -> memref<1x128xf32, #tpu.memory_space<vmem>>
    %79 = tpu.memref_slice %arg4[%c5_i32_57] : memref<8x!tpu.dma_semaphore, #tpu.memory_space<semaphore_mem>> -> memref<1x!tpu.dma_semaphore, #tpu.memory_space<semaphore_mem>>
    %80 = tpu.memref_squeeze %79 : memref<1x!tpu.dma_semaphore, #tpu.memory_space<semaphore_mem>> -> memref<!tpu.dma_semaphore, #tpu.memory_space<semaphore_mem>>
    tpu.wait_dma2 semaphore(%80 : memref<!tpu.dma_semaphore, #tpu.memory_space<semaphore_mem>>) src(%77 : memref<1x128xf32, #tpu.memory_space<any>>) dst(%78 : memref<1x128xf32, #tpu.memory_space<vmem>>)
    %c6_i32_62 = arith.constant 6 : i32
    %c0_i32_63 = arith.constant 0 : i32
    %c0_i32_64 = arith.constant 0 : i32
    %81 = tpu.memref_slice %arg2[%c0_i32_63, %c0_i32_64] : memref<512x128xf32, #tpu.memory_space<any>> -> memref<1x128xf32, #tpu.memory_space<any>>
    %c6_i32_65 = arith.constant 6 : i32
    %c0_i32_66 = arith.constant 0 : i32
    %82 = tpu.memref_slice %arg3[%c6_i32_65, %c0_i32_66] : memref<8x128xf32, #tpu.memory_space<vmem>> -> memref<1x128xf32, #tpu.memory_space<vmem>>
    %83 = tpu.memref_slice %arg4[%c6_i32_62] : memref<8x!tpu.dma_semaphore, #tpu.memory_space<semaphore_mem>> -> memref<1x!tpu.dma_semaphore, #tpu.memory_space<semaphore_mem>>
    %84 = tpu.memref_squeeze %83 : memref<1x!tpu.dma_semaphore, #tpu.memory_space<semaphore_mem>> -> memref<!tpu.dma_semaphore, #tpu.memory_space<semaphore_mem>>
    tpu.wait_dma2 semaphore(%84 : memref<!tpu.dma_semaphore, #tpu.memory_space<semaphore_mem>>) src(%81 : memref<1x128xf32, #tpu.memory_space<any>>) dst(%82 : memref<1x128xf32, #tpu.memory_space<vmem>>)
    %c7_i32_67 = arith.constant 7 : i32
    %c0_i32_68 = arith.constant 0 : i32
    %c0_i32_69 = arith.constant 0 : i32
    %85 = tpu.memref_slice %arg2[%c0_i32_68, %c0_i32_69] : memref<512x128xf32, #tpu.memory_space<any>> -> memref<1x128xf32, #tpu.memory_space<any>>
    %c7_i32_70 = arith.constant 7 : i32
    %c0_i32_71 = arith.constant 0 : i32
    %86 = tpu.memref_slice %arg3[%c7_i32_70, %c0_i32_71] : memref<8x128xf32, #tpu.memory_space<vmem>> -> memref<1x128xf32, #tpu.memory_space<vmem>>
    %87 = tpu.memref_slice %arg4[%c7_i32_67] : memref<8x!tpu.dma_semaphore, #tpu.memory_space<semaphore_mem>> -> memref<1x!tpu.dma_semaphore, #tpu.memory_space<semaphore_mem>>
    %88 = tpu.memref_squeeze %87 : memref<1x!tpu.dma_semaphore, #tpu.memory_space<semaphore_mem>> -> memref<!tpu.dma_semaphore, #tpu.memory_space<semaphore_mem>>
    tpu.wait_dma2 semaphore(%88 : memref<!tpu.dma_semaphore, #tpu.memory_space<semaphore_mem>>) src(%85 : memref<1x128xf32, #tpu.memory_space<any>>) dst(%86 : memref<1x128xf32, #tpu.memory_space<vmem>>)
    %c0 = arith.constant 0 : index
    %c0_72 = arith.constant 0 : index
    %89 = vector.load %arg3[%c0, %c0_72] : memref<8x128xf32, #tpu.memory_space<vmem>>, vector<8x128xf32>
    %cst = arith.constant 11.3137083 : f32
    %90 = vector.broadcast %cst : f32 to vector<8x128xf32>
    %91 = arith.mulf %89, %90 : vector<8x128xf32>
    %c0_73 = arith.constant 0 : index
    %c0_74 = arith.constant 0 : index
    %92 = vector.load %arg3[%c0_73, %c0_74] : memref<8x128xf32, #tpu.memory_space<vmem>>, vector<8x128xf32>
    tpu.vector_store %arg3[%c0_73, %c0_74], %91 {strides = array<i32>} : memref<8x128xf32, #tpu.memory_space<vmem>>, vector<8x128xf32>,
    return
  }
  func.func @transform_1(%arg0: i32, %arg1: memref<16xi32, #tpu.memory_space<smem>>) -> (i32, i32) {
    %c0_i32 = arith.constant 0 : i32
    %c0_i32_0 = arith.constant 0 : i32
    return %arg0, %c0_i32 : i32, i32
  }
}

</mosaic_0001>

<bundles_post_ra>
// kernel: tpu_custom_call.1
= control target key start
LH: loop header
LB: loop body
LE: loop exit
PB: predicated region body
PF: predicated region fallthrough
CT: control target
= control target key end

     0   :  { %s667_s12 = smov [#allocation4]   ;;  %s869_s0 = inlined_call_operand.hbm [shape: s32[16], index: 0, kind: input, shape index: {}]   ;;  %s870_s1 = inlined_call_operand.hbm [shape: f32[512,128], index: 1, kind: input, shape index: {}]   ;;  %s871_s2 = inlined_call_operand.hbm [shape: f32[16,128], index: 2, kind: output, shape index: {}]  }
   0x1   :  { %s8_s11 = sshll.u32 %s869_s0, 4  ;;  %s9_s11 = int_to_ptr.hbm [resolvable:$true] %s8_s11 }
   0x2   :  { %11 = dma.hbm_to_smem %s9_s11, 16, %s667_s12, [#allocation3] }
   0x3   :  { %633 = dma.done.wait [#allocation3], 16 }
   0x4   :  { %634 = vsyncadd [#allocation3], 4294967280 }
   0x5   :  { %14 = sfence }
   0x6   :  { %15 = vsyncpa [#allocation6], 0 }
   0x7   :  { %17 = vsyncpa [#allocation6 + $0x1], 0  ;;  %s686_s13 = smov 0   ;;  %s688_s14 = smov 0  }
   0x8   :  { %s690_s15 = smov 0  }
   0x9 LB: > { %s340_s0 = sadd.s32 4294967295, %s665_s15   ;;  %s703_s16 = sadd.s32 1, %s665_s15   ;;  %s665_s15 = sphi %s690_s15, %s876_s15   ;;  %s661_s14 = sphi %s688_s14, %s875_s14   ;;  %s657_s13 = sphi %s686_s13, %s874_s13  }
   0xa   : > { %s26_s17 = ssub.s32 %s665_s15, %s703_s16  ;;  %s29_s18 = sadd.s32 1, %s661_s14 }
   0xb   : > { %p27_p0 = scmp.eq.s32.totalorder %s26_s17, 0  ;;  %p341_p1 = scmp.ne.s32.totalorder %s26_s17, 0 }
   0xc   : > { %p33_p2 = scmp.eq.s32.totalorder %s665_s15, 1  ;;  %p38_p3 = scmp.ne.s32.totalorder %s661_s14, %s657_s13 }
   0xd   : > { %s712_s19 = scalar_select %p27_p0, %s661_s14, %s29_s18  }
   0xe   : > { %p714_p4 = por %p341_p1, %p33_p2  ;;  %p39_p5 = scmp.eq.s32.totalorder %s340_s0, 1 }
   0xf   : > { %p342_p7 = scmp.ge.s32.totalorder %s665_s15, 2 }
  0x10   : > { %p718_p6 = por %p39_p5, %p38_p3  ;;  %s53_s22 = sand.u32 (!%p342_p7), 1, %s661_s14  }
  0x11   : > { %48 = sbr.rel (%p342_p7) target bundleno = 151 (0x97), region = 12  ;;  %s725_s23 = sshll.u32 (!%p342_p7), %s665_s15, 3 }
  0x12   : > { %s343_s24 = sshll.u32 (!%p342_p7), %s53_s22, 3  ;;  %s57_s25 = sld [smem:[#allocation4 + %s725_s23]] (!%p342_p7) }
  0x13   : > { %s72_s26 = sadd.s32 (!%p342_p7), 1, %s725_s23  ;;  %s731_s27 = scalar_lea.vmem (!%p342_p7), [#allocation5], %s343_s24 }
  0x14   : > { %s68_s28 = sshll.u32 (!%p342_p7), %s731_s27, 4  ;;  %s73_s29 = sld [smem:[#allocation4 + %s72_s26]] (!%p342_p7)  ;;  %s734_s28 = int_to_ptr.vmem [resolvable:$true] %s68_s28 }
  0x15   : > { %s75_s30 = scalar_lea.vmem (!%p342_p7), %s731_s27, 1 [#allocation5]  ;;  %s90_s4 = sadd.s32 (!%p342_p7), 2, %s725_s23 }
  0x16   : > { %s737_s3 = sshll.u32 %s75_s30, 4  ;;  %s741_s5 = sld [smem:[#allocation4 + %s90_s4]]  ;;  %s87_s3 = int_to_ptr.vmem [resolvable:$true] %s737_s3 }
  0x17   : > { %s93_s9 = scalar_lea.vmem %s731_s27, 2 [#allocation5]  ;;  %s755_s4 = scalar_lea.hbm %s870_s1, 512 }
  0x18   : > { %s58_s8 = scalar_lea.hbm %s870_s1, %s57_s25  ;;  %s747_s11 = sshll.u32 %s93_s9, 4  ;;  %s105_s11 = int_to_ptr.vmem [resolvable:$true] %s747_s11 }
  0x19   : > { %s66_s10 = sshll.u32 %s58_s8, 4  ;;  %s67_s10 = int_to_ptr.hbm [resolvable:$true] %s66_s10 }
  0x1a   : > { %s74_s17 = scalar_lea.hbm %s870_s1, %s73_s29  ;;  %s401_s18 = sshra.s32 %s67_s10, 4  ;;  %s402_s18 = int_to_ptr.hbm [resolvable:$true] %s401_s18 }
  0x1b   : > { %s403_s24 = scalar_lea.hbm %s402_s18, 1  ;;  %p406_p9 = scmp.lt.s32.totalorder %s402_s18, %s870_s1 }
  0x1c   : > { %p404_p8 = scmp.ne.s32.totalorder %s402_s18, %s403_s24  ;;  %p407_p10 = scmp.lt.s32.totalorder %s755_s4, %s403_s24 }
  0x1e   : > { %p408_p11 = por %p407_p10, %p406_p9 }
  0x20   : > { %p409_p12 = pnand %p408_p11, %p404_p8 }
  0x22   : > { %412 = shalt.err (!%p409_p12)  }
  0x23   : > { %71 = dma.hbm_to_vmem [thread:$0]  %s67_s10, 16, %s734_s28, [#allocation2] }
  0x24   : > { %s84_s29 = sshll.u32 %s74_s17, 4  ;;  %s92_s9 = scalar_lea.hbm %s870_s1, %s741_s5  ;;  %s85_s29 = int_to_ptr.hbm [resolvable:$true] %s84_s29 }
  0x25   : > { %s425_s12 = sshra.s32 %s85_s29, 4  ;;  %s426_s12 = int_to_ptr.hbm [resolvable:$true] %s425_s12 }
  0x26   : > { %s427_s0 = scalar_lea.hbm %s426_s12, 1  ;;  %p430_p0 = scmp.lt.s32.totalorder %s426_s12, %s870_s1 }
  0x27   : > { %p428_p13 = scmp.ne.s32.totalorder %s426_s12, %s427_s0  ;;  %p431_p1 = scmp.lt.s32.totalorder %s755_s4, %s427_s0 }
  0x29   : > { %p432_p2 = por %p431_p1, %p430_p0 }
  0x2b   : > { %p433_p3 = pnand %p432_p2, %p428_p13 }
  0x2d   : > { %436 = shalt.err (!%p433_p3)  }
  0x2e   : > { %89 = dma.hbm_to_vmem [thread:$0]  %s85_s29, 16, %s87_s3, [#allocation2 + $0x1] }
  0x2f   : > { %s102_s10 = sshll.u32 %s92_s9, 4  ;;  %s108_s17 = sadd.s32 3, %s725_s23  ;;  %s103_s10 = int_to_ptr.hbm [resolvable:$true] %s102_s10 }
  0x30   : > { %s109_s5 = sld [smem:[#allocation4 + %s108_s17]]  ;;  %s449_s26 = sshra.s32 %s103_s10, 4  ;;  %s450_s26 = int_to_ptr.hbm [resolvable:$true] %s449_s26 }
  0x31   : > { %s451_s30 = scalar_lea.hbm %s450_s26, 1  ;;  %p454_p7 = scmp.lt.s32.totalorder %s450_s26, %s870_s1 }
  0x32   : > { %p452_p5 = scmp.ne.s32.totalorder %s450_s26, %s451_s30  ;;  %p455_p8 = scmp.lt.s32.totalorder %s755_s4, %s451_s30 }
  0x34   : > { %p456_p9 = por %p455_p8, %p454_p7 }
  0x36   : > { %p457_p10 = pnand %p456_p9, %p452_p5 }
  0x38   : > { %460 = shalt.err (!%p457_p10)  }
  0x39   : > { %107 = dma.hbm_to_vmem [thread:$0]  %s103_s10, 16, %s105_s11, [#allocation2 + $0x2] }
  0x3a   : > { %s111_s3 = scalar_lea.vmem %s731_s27, 3 [#allocation5]  ;;  %s126_s29 = sadd.s32 4, %s725_s23 }
  0x3b   : > { %s122_s7 = sshll.u32 %s111_s3, 4  ;;  %s127_s8 = sld [smem:[#allocation4 + %s126_s29]]  ;;  %s123_s7 = int_to_ptr.vmem [resolvable:$true] %s122_s7 }
  0x3c   : > { %s129_s9 = scalar_lea.vmem %s731_s27, 4 [#allocation5]  ;;  %s144_s0 = sadd.s32 5, %s725_s23 }
  0x3d   : > { %s781_s12 = sshll.u32 %s129_s9, 4  ;;  %s110_s11 = scalar_lea.hbm %s870_s1, %s109_s5  ;;  %s141_s12 = int_to_ptr.vmem [resolvable:$true] %s781_s12 }
  0x3e   : > { %s120_s10 = sshll.u32 %s110_s11, 4  ;;  %s788_s17 = sld [smem:[#allocation4 + %s144_s0]]  ;;  %s121_s10 = int_to_ptr.hbm [resolvable:$true] %s120_s10 }
  0x3f   : > { %s147_s26 = scalar_lea.vmem %s731_s27, 5 [#allocation5]  ;;  %s473_s30 = sshra.s32 %s121_s10, 4  ;;  %s474_s30 = int_to_ptr.hbm [resolvable:$true] %s473_s30 }
  0x40   : > { %s475_s6 = scalar_lea.hbm %s474_s30, 1  ;;  %p478_p12 = scmp.lt.s32.totalorder %s474_s30, %s870_s1 }
  0x41   : > { %p476_p11 = scmp.ne.s32.totalorder %s474_s30, %s475_s6  ;;  %p479_p13 = scmp.lt.s32.totalorder %s755_s4, %s475_s6 }
  0x43   : > { %p480_p0 = por %p479_p13, %p478_p12 }
  0x45   : > { %p481_p1 = pnand %p480_p0, %p476_p11 }
  0x47   : > { %484 = shalt.err (!%p481_p1)  }
  0x48   : > { %125 = dma.hbm_to_vmem [thread:$0]  %s121_s10, 16, %s123_s7, [#allocation2 + $0x3] }
  0x49   : > { %s128_s9 = scalar_lea.hbm %s870_s1, %s127_s8  ;;  %s798_s0 = sshll.u32 %s147_s26, 4  ;;  %s159_s0 = int_to_ptr.vmem [resolvable:$true] %s798_s0 }
  0x4a   : > { %s138_s18 = sshll.u32 %s128_s9, 4  ;;  %s162_s24 = sadd.s32 6, %s725_s23  ;;  %s139_s18 = int_to_ptr.hbm [resolvable:$true] %s138_s18 }
  0x4b   : > { %s497_s11 = sshra.s32 %s139_s18, 4  ;;  %s498_s11 = int_to_ptr.hbm [resolvable:$true] %s497_s11 }
  0x4c   : > { %s499_s30 = scalar_lea.hbm %s498_s11, 1  ;;  %p502_p3 = scmp.lt.s32.totalorder %s498_s11, %s870_s1 }
  0x4d   : > { %p500_p2 = scmp.ne.s32.totalorder %s498_s11, %s499_s30  ;;  %p503_p5 = scmp.lt.s32.totalorder %s755_s4, %s499_s30 }
  0x4f   : > { %p504_p7 = por %p503_p5, %p502_p3 }
  0x51   : > { %p505_p8 = pnand %p504_p7, %p500_p2 }
  0x53   : > { %508 = shalt.err (!%p505_p8)  }
  0x54   : > { %143 = dma.hbm_to_vmem [thread:$0]  %s139_s18, 16, %s141_s12, [#allocation2 + $0x4] }
  0x55   : > { %s146_s10 = scalar_lea.hbm %s870_s1, %s788_s17  ;;  %s163_s26 = sld [smem:[#allocation4 + %s162_s24]] }
  0x56   : > { %s156_s3 = sshll.u32 %s146_s10, 4  ;;  %s165_s5 = scalar_lea.vmem %s731_s27, 6 [#allocation5]  ;;  %s157_s3 = int_to_ptr.hbm [resolvable:$true] %s156_s3 }
  0x57   : > { %s813_s29 = sshll.u32 %s165_s5, 4  ;;  %s521_s9 = sshra.s32 %s157_s3, 4  ;;  %s522_s9 = int_to_ptr.hbm [resolvable:$true] %s521_s9  ;;  %s177_s29 = int_to_ptr.vmem [resolvable:$true] %s813_s29 }
  0x58   : > { %s523_s11 = scalar_lea.hbm %s522_s9, 1  ;;  %p526_p10 = scmp.lt.s32.totalorder %s522_s9, %s870_s1 }
  0x59   : > { %p524_p9 = scmp.ne.s32.totalorder %s522_s9, %s523_s11  ;;  %p527_p11 = scmp.lt.s32.totalorder %s755_s4, %s523_s11 }
  0x5b   : > { %p528_p12 = por %p527_p11, %p526_p10 }
  0x5d   : > { %p529_p13 = pnand %p528_p12, %p524_p9 }
  0x5f   : > { %532 = shalt.err (!%p529_p13)  }
  0x60   : > { %161 = dma.hbm_to_vmem [thread:$0]  %s157_s3, 16, %s159_s0, [#allocation2 + $0x5] }
  0x61   : > { %s180_s12 = sadd.s32 7, %s725_s23  ;;  %s183_s18 = scalar_lea.vmem %s731_s27, 7 [#allocation5] }
  0x62   : > { %s181_s17 = sld [smem:[#allocation4 + %s180_s12]]  ;;  %s164_s7 = scalar_lea.hbm %s870_s1, %s163_s26 }
  0x63   : > { %s174_s8 = sshll.u32 %s164_s7, 4  ;;  %s194_s10 = sshll.u32 %s183_s18, 4  ;;  %s175_s8 = int_to_ptr.hbm [resolvable:$true] %s174_s8  ;;  %s195_s10 = int_to_ptr.vmem [resolvable:$true] %s194_s10 }
  0x64   : > { %s545_s5 = sshra.s32 %s175_s8, 4  ;;  %s546_s5 = int_to_ptr.hbm [resolvable:$true] %s545_s5 }
  0x65   : > { %s547_s9 = scalar_lea.hbm %s546_s5, 1  ;;  %p550_p1 = scmp.lt.s32.totalorder %s546_s5, %s870_s1 }
  0x66   : > { %p548_p0 = scmp.ne.s32.totalorder %s546_s5, %s547_s9  ;;  %p551_p2 = scmp.lt.s32.totalorder %s755_s4, %s547_s9 }
  0x68   : > { %p552_p3 = por %p551_p2, %p550_p1 }
  0x6a   : > { %p553_p5 = pnand %p552_p3, %p548_p0 }
  0x6c   : > { %556 = shalt.err (!%p553_p5)  }
  0x6d   : > { %179 = dma.hbm_to_vmem [thread:$0]  %s175_s8, 16, %s177_s29, [#allocation2 + $0x6] }
  0x6e   : > { %s182_s26 = scalar_lea.hbm %s870_s1, %s181_s17 }
  0x6f   : > { %s192_s6 = sshll.u32 %s182_s26, 4  ;;  %s193_s6 = int_to_ptr.hbm [resolvable:$true] %s192_s6 }
  0x70   : > { %s569_s12 = sshra.s32 %s193_s6, 4  ;;  %s570_s12 = int_to_ptr.hbm [resolvable:$true] %s569_s12 }
  0x71   : > { %s571_s18 = scalar_lea.hbm %s570_s12, 1  ;;  %p574_p8 = scmp.lt.s32.totalorder %s570_s12, %s870_s1 }
  0x72   : > { %p572_p7 = scmp.ne.s32.totalorder %s570_s12, %s571_s18  ;;  %p575_p9 = scmp.lt.s32.totalorder %s755_s4, %s571_s18 }
  0x74   : > { %p576_p10 = por %p575_p9, %p574_p8 }
  0x76   : > { %p577_p11 = pnand %p576_p10, %p572_p7 }
  0x78   : > { %580 = shalt.err (!%p577_p11)  }
  0x79   : > { %197 = dma.hbm_to_vmem [thread:$0]  %s193_s6, 16, %s195_s10, [#allocation2 + $0x7] }
  0x7a   : > { %635 = dma.done.wait [#allocation2], 16 }
  0x7b   : > { %636 = vsyncadd [#allocation2], 4294967280 }
  0x7c   : > { %637 = dma.done.wait [#allocation2 + $0x1], 16 }
  0x7d   : > { %638 = vsyncadd [#allocation2 + $0x1], 4294967280 }
  0x7e   : > { %639 = dma.done.wait [#allocation2 + $0x2], 16 }
  0x7f   : > { %640 = vsyncadd [#allocation2 + $0x2], 4294967280 }
  0x80   : > { %641 = dma.done.wait [#allocation2 + $0x3], 16 }
  0x81   : > { %642 = vsyncadd [#allocation2 + $0x3], 4294967280 }
  0x82   : > { %643 = dma.done.wait [#allocation2 + $0x4], 16 }
  0x83   : > { %644 = vsyncadd [#allocation2 + $0x4], 4294967280 }
  0x84   : > { %645 = dma.done.wait [#allocation2 + $0x5], 16 }
  0x85   : > { %646 = vsyncadd [#allocation2 + $0x5], 4294967280 }
  0x86   : > { %647 = dma.done.wait [#allocation2 + $0x6], 16 }
  0x87   : > { %648 = vsyncadd [#allocation2 + $0x6], 4294967280 }
  0x88   : > { %649 = dma.done.wait [#allocation2 + $0x7], 16 }
  0x89   : > { %650 = vsyncadd [#allocation2 + $0x7], 4294967280  ;;  %s229_s17 = scalar_lea.hbm %s871_s2, %s725_s23  ;;  %v215_v0 = vld [vmem:[%s731_s27] sm:$0xff]  ;;  %s219_s8 = scalar_lea.sflag [#allocation6], %s53_s22 }
  0x8a   : > { %s233_s7 = sshll.u32 %s229_s17, 4  ;;  %v216_v1 = vmul.f32 11.313708, %v215_v0  ;;  %s613_s3 = scalar_lea.hbm %s871_s2, 16  ;;  %s234_s7 = int_to_ptr.hbm [resolvable:$true] %s233_s7 }
  0x8b   : > { %s607_s10 = sshra.s32 %s234_s7, 4  ;;  %s608_s10 = int_to_ptr.hbm [resolvable:$true] %s607_s10 }
  0x8c   : > { %217 = vst [vmem:[%s731_s27] sm:$0xff] %v216_v1  ;;  %s609_s5 = scalar_lea.hbm %s608_s10, 8  ;;  %p614_p1 = scmp.lt.s32.totalorder %s608_s10, %s871_s2 }
  0x8d   : > { %p610_p12 = scmp.ne.s32.totalorder %s608_s10, %s609_s5  ;;  %p615_p2 = scmp.lt.s32.totalorder %s613_s3, %s609_s5 }
  0x8f   : > { %p611_p13 = pnand %p610_p12, %p714_p4  ;;  %p616_p3 = por %p615_p2, %p614_p1 }
  0x91   : > { %p612_p0 = pneg %p611_p13 }
  0x93   : > { %p617_p5 = pnand %p616_p3, %p612_p0 }
  0x95   : > { %620 = shalt.err (!%p617_p5)
}
  0x96   : > { %357 = dma.vmem_to_hbm [thread:$0]  (%p714_p4), %s734_s28, 128, %s234_s7, %s219_s8  }
  0x97 PF: > { %p363_p7 = scmp.ge.s32.totalorder %s665_s15, 1  ;;  %s245_s22 = sand.u32 1, %s657_s13  }
  0x98   : > { %s246_s27 = scalar_lea.sflag [#allocation6], %s245_s22 }
  0x99   : > { %p360_p8 = pnand %p363_p7, %p718_p6 }
  0x9b   : > { %p361_p9 = pneg %p360_p8 }
  0x9d   : > { %652 = dma.done.wait (%p361_p9), %s246_s27, 128  }
  0x9e   : > { %654 = vsyncadd (%p361_p9), %s246_s27, 4294967168  ;;  %p20_p10 = scmp.ge.s32.totalorder %s703_s16, 3   ;;  %s874_s13 = smov %s661_s14 }
  0x9f   : > { %s875_s14 = smov %s712_s19  ;;  %s876_s15 = smov %s703_s16 }
  0xa0   :  { %22 = sbr.rel (!%p20_p10) target bundleno = 9 (0x9), region = 105 }
  0xa5   :  { %252 = vsyncpa [#allocation6], 1 }
  0xa6   :  { %254 = vsyncpa [#allocation6 + $0x1], 1 }
  0xa7   :  { %255 = vsyncmov [#allocation2] }
  0xaa   :  { %s256_s15 = vpop.sfrf %255 }
  0xab   :  { %p349_p4 = scmp.ne.s32.totalorder %s256_s15, 0 }
  0xad   :  { %260 = shalt.err (%p349_p4)  }
  0xae   :  { %262 = vsyncmov [#allocation2 + $0x1] }
  0xb1   :  { %s263_s20 = vpop.sfrf %262 }
  0xb2   :  { %p350_p6 = scmp.ne.s32.totalorder %s263_s20, 0 }
  0xb4   :  { %267 = shalt.err (%p350_p6)  }
  0xb5   :  { %269 = vsyncmov [#allocation2 + $0x2] }
  0xb8   :  { %s270_s21 = vpop.sfrf %269 }
  0xb9   :  { %p351_p11 = scmp.ne.s32.totalorder %s270_s21, 0 }
  0xbb   :  { %274 = shalt.err (%p351_p11)  }
  0xbc   :  { %276 = vsyncmov [#allocation2 + $0x3] }
  0xbf   :  { %s277_s28 = vpop.sfrf %276 }
  0xc0   :  { %p352_p12 = scmp.ne.s32.totalorder %s277_s28, 0 }
  0xc2   :  { %281 = shalt.err (%p352_p12)  }
  0xc3   :  { %283 = vsyncmov [#allocation2 + $0x4] }
  0xc6   :  { %s284_s16 = vpop.sfrf %283 }
  0xc7   :  { %p353_p13 = scmp.ne.s32.totalorder %s284_s16, 0 }
  0xc9   :  { %288 = shalt.err (%p353_p13)  }
  0xca   :  { %290 = vsyncmov [#allocation2 + $0x5] }
  0xcd   :  { %s291_s1 = vpop.sfrf %290 }
  0xce   :  { %p354_p0 = scmp.ne.s32.totalorder %s291_s1, 0 }
  0xd0   :  { %295 = shalt.err (%p354_p0)  }
  0xd1   :  { %297 = vsyncmov [#allocation2 + $0x6] }
  0xd4   :  { %s298_s2 = vpop.sfrf %297 }
  0xd5   :  { %p355_p1 = scmp.ne.s32.totalorder %s298_s2, 0 }
  0xd7   :  { %302 = shalt.err (%p355_p1)  }
  0xd8   :  { %304 = vsyncmov [#allocation2 + $0x7] }
  0xdb   :  { %s305_s13 = vpop.sfrf %304 }
  0xdc   :  { %p356_p2 = scmp.ne.s32.totalorder %s305_s13, 0 }
  0xde   :  { %309 = shalt.err (%p356_p2)  }

</bundles_post_ra>
